<compile_context>
chip_gen: v5e
topology: v5e:2x2
jax: 0.10.0
libtpu: 0.0.40
codegen_flags: <defaults>
</compile_context>

<pallas_src>
import jax
import jax.numpy as jnp
from jax.experimental import pallas as pl
from jax.experimental.pallas import tpu as pltpu


def _round_up(x, m):
    return (x + m - 1) // m * m


def _soft_dot_attention_kernel(x_ref, ctx_ref, w_in_ref, w_out_a_ref, w_out_b_ref,
                               h_ref, attn_ref):
    f32 = jnp.float32

    x = x_ref[...].astype(f32)        # (TB, D)
    ctx = ctx_ref[...].astype(f32)    # (TB, S, D)

    # target = linear_in(input)                         (TB, D)   -> MXU
    target = jnp.dot(x, w_in_ref[...].astype(f32), preferred_element_type=f32)

    # attention logits: broadcast-multiply + lane reduce (VPU + XLU); avoids
    # degenerate per-batch (S,D)@(D,1) MXU matmuls.
    logits = jnp.sum(ctx * target[:, None, :], axis=-1)            # (TB, S)

    # softmax over the (unpadded) source dimension
    m = jnp.max(logits, axis=-1, keepdims=True)
    e = jnp.exp(logits - m)
    attn = e / jnp.sum(e, axis=-1, keepdims=True)                  # (TB, S)

    # weighted_context = attn . context                 (TB, D)
    # broadcast-multiply + sublane reduce; avoids degenerate M=1 MXU matmuls.
    weighted = jnp.sum(attn[:, :, None] * ctx, axis=1)             # (TB, D)

    # h_tilde = tanh(linear_out(cat([weighted_context, input])))   (TB, D) -> MXU
    h = jnp.tanh(
        jnp.dot(weighted, w_out_a_ref[...].astype(f32), preferred_element_type=f32)
        + jnp.dot(x, w_out_b_ref[...].astype(f32), preferred_element_type=f32))

    h_ref[...] = h.astype(h_ref.dtype)
    attn_ref[...] = attn.astype(attn_ref.dtype)


def soft_dot_attention(x, context, w_in_t, w_out_t, *, block_b=None):
    """x: (B, D); context: (B, S, D); w_in_t: (D, D); w_out_t: (2D, D).

    w_in_t / w_out_t are the transposed nn.Linear weights so the kernel
    computes y = x @ W^T directly.
    """
    B, D = x.shape
    Bc, S, Dc = context.shape
    assert Bc == B and Dc == D
    assert w_in_t.shape == (D, D)
    assert w_out_t.shape == (2 * D, D)

    # Split the output projection so no concat is needed in-kernel.
    w_out_a = w_out_t[:D]     # multiplies weighted_context
    w_out_b = w_out_t[D:]     # multiplies input

    # ---- generation-aware VMEM budgeting -----------------------------------
    try:
        vmem_cap = int(pltpu.get_tpu_info().vmem_capacity_bytes)
    except Exception:
        vmem_cap = 64 << 20                       # conservative (v7x per-TC)
    vmem_limit = min(vmem_cap * 3 // 4, 100 << 20)  # 48 MiB v7x, ~96 MiB v5e/v6e

    ctx_itemsize = jnp.dtype(context.dtype).itemsize
    # Per batch-row VMEM cost: double-buffered context tile + two f32 (S, D)
    # elementwise temporaries (logits / weighted paths) + small row vectors.
    row_bytes = S * D * (2 * ctx_itemsize + 2 * 4) + (4 * D + 2 * S) * 4
    weight_bytes = 3 * D * D * 4 * 2               # worst case: double-buffered
    budget = max(vmem_limit - weight_bytes - (4 << 20), 1 << 20)

    if block_b is None:
        block_b = max(8, min(512, (budget // row_bytes) // 8 * 8))
    if block_b >= B:
        block_b = B
        # v7x megacore: give the 'parallel' batch axis >= 2 grid steps when it
        # splits evenly (so no batch padding is introduced).
        if B >= 16 and (B // 2) % 8 == 0:
            block_b = B // 2
    # TODO(synk): for very large S*D where even an 8-row context tile exceeds
    # the VMEM budget, add a second ('arbitrary') grid axis over S with an
    # online-softmax accumulator instead of holding the full (block_b, S, D)
    # slab.

    # Pad ONLY the batch dim, and only if the tile doesn't divide it.  S and D
    # are never padded: full-extent block dims are legal regardless of (8,128)
    # alignment, so the dominant context stream is read once, unmodified.
    Bp = _round_up(B, block_b)
    if Bp != B:
        x_in = jnp.pad(x, ((0, Bp - B), (0, 0)))
        ctx_in = jnp.pad(context, ((0, Bp - B), (0, 0), (0, 0)))
    else:
        x_in, ctx_in = x, context

    grid = (Bp // block_b,)

    h_p, attn_p = pl.pallas_call(
        _soft_dot_attention_kernel,
        grid=grid,
        in_specs=[
            pl.BlockSpec((block_b, D), lambda i: (i, 0)),         # x (tiled)
            pl.BlockSpec((block_b, S, D), lambda i: (i, 0, 0)),   # context (streamed)
            pl.BlockSpec((D, D), lambda i: (0, 0)),               # W_in^T      (resident)
            pl.BlockSpec((D, D), lambda i: (0, 0)),               # W_out^T[:D] (resident)
            pl.BlockSpec((D, D), lambda i: (0, 0)),               # W_out^T[D:] (resident)
        ],
        out_specs=[
            pl.BlockSpec((block_b, D), lambda i: (i, 0)),         # h_tilde
            pl.BlockSpec((block_b, S), lambda i: (i, 0)),         # attn
        ],
        out_shape=(
            jax.ShapeDtypeStruct((Bp, D), x.dtype),
            jax.ShapeDtypeStruct((Bp, S), x.dtype),
        ),
        compiler_params=pltpu.CompilerParams(
            dimension_semantics=("parallel",),
            vmem_limit_bytes=vmem_limit,
        ),
    )(x_in, ctx_in, w_in_t, w_out_a, w_out_b)

    if Bp != B:
        return h_p[:B], attn_p[:B]
    return h_p, attn_p


def reference(x, context, w_in_t, w_out_t):
    target = x @ w_in_t
    logits = jnp.einsum('bsd,bd->bs', context, target)
    attn = jax.nn.softmax(logits, axis=-1)
    weighted = jnp.einsum('bs,bsd->bd', attn, context)
    h = jnp.tanh(jnp.concatenate([weighted, x], axis=1) @ w_out_t)
    return h, attn


if __name__ == "__main__":
    B, S, D = 2, 8, 32

    key = jax.random.PRNGKey(0)
    k_x, k_ctx, k_win, k_wout = jax.random.split(key, 4)

    x = jax.random.normal(k_x, (B, D), dtype=jnp.float32)
    context = jax.random.normal(k_ctx, (B, S, D), dtype=jnp.float32)

    # Deterministic param init mimicking nn.Linear (uniform +/- 1/sqrt(fan_in)),
    # stored transposed so the kernel computes y = x @ W^T directly.
    # (The module uses bias=False for both linears, so no bias terms.)
    bound_in = 1.0 / (D ** 0.5)
    bound_out = 1.0 / ((2 * D) ** 0.5)
    w_in_t = jax.random.uniform(k_win, (D, D), jnp.float32, -bound_in, bound_in)
    w_out_t = jax.random.uniform(k_wout, (2 * D, D), jnp.float32,
                                 -bound_out, bound_out)

    h, attn = soft_dot_attention(x, context, w_in_t, w_out_t)
    h = jax.block_until_ready(h)
    attn = jax.block_until_ready(attn)

    h_ref, attn_ref = reference(x, context, w_in_t, w_out_t)
    assert jnp.allclose(h, h_ref, atol=2e-3, rtol=2e-3)
    assert jnp.allclose(attn, attn_ref, atol=2e-3, rtol=2e-3)

    print("KERNEL_OK")
</pallas_src>

<mosaic_0001>
module attributes {stable_mosaic.version = 11 : i64} {
  func.func @_soft_dot_attention_kernel(%arg0: i32, %arg1: memref<2x32xf32, #tpu.memory_space<vmem>>, %arg2: memref<2x8x32xf32, #tpu.memory_space<vmem>>, %arg3: memref<32x32xf32, #tpu.memory_space<vmem>>, %arg4: memref<32x32xf32, #tpu.memory_space<vmem>>, %arg5: memref<32x32xf32, #tpu.memory_space<vmem>>, %arg6: memref<2x32xf32, #tpu.memory_space<vmem>>, %arg7: memref<2x8xf32, #tpu.memory_space<vmem>>) attributes {dimension_semantics = [#tpu.dimension_semantics<parallel>], iteration_bounds = array<i64: 1>, scalar_prefetch = 0 : i64, scratch_operands = 0 : i64, tpu.core_type = #tpu.core_type<tc>, window_params = [{transform_indices = @transform_0, window_bounds = array<i64: 2, 32>}, {transform_indices = @transform_1, window_bounds = array<i64: 2, 8, 32>}, {pipeline_mode = #tpu.pipeline_mode<synchronous>, transform_indices = @transform_2, window_bounds = array<i64: 32, 32>}, {pipeline_mode = #tpu.pipeline_mode<synchronous>, transform_indices = @transform_3, window_bounds = array<i64: 32, 32>}, {pipeline_mode = #tpu.pipeline_mode<synchronous>, transform_indices = @transform_4, window_bounds = array<i64: 32, 32>}, {transform_indices = @transform_5, window_bounds = array<i64: 2, 32>}, {transform_indices = @transform_6, window_bounds = array<i64: 2, 8>}]} {
    %c0 = arith.constant 0 : index
    %c0_0 = arith.constant 0 : index
    %0 = vector.load %arg1[%c0, %c0_0] : memref<2x32xf32, #tpu.memory_space<vmem>>, vector<2x32xf32>
    %c0_1 = arith.constant 0 : index
    %c0_2 = arith.constant 0 : index
    %c0_3 = arith.constant 0 : index
    %1 = vector.load %arg2[%c0_1, %c0_2, %c0_3] : memref<2x8x32xf32, #tpu.memory_space<vmem>>, vector<2x8x32xf32>
    %c0_4 = arith.constant 0 : index
    %c0_5 = arith.constant 0 : index
    %2 = vector.load %arg3[%c0_4, %c0_5] : memref<32x32xf32, #tpu.memory_space<vmem>>, vector<32x32xf32>
    %cst = arith.constant dense<0.000000e+00> : vector<2x32xf32>
    %3 = tpu.matmul %0, %2, %cst {dimension_numbers = #tpu.dot_dimension_numbers<[1], [0], [0], [1], [0, 0, 1, 1], [], []>} : vector<2x32xf32>, vector<32x32xf32>, vector<2x32xf32> -> vector<2x32xf32>
    %4 = vector.shape_cast %3 : vector<2x32xf32> to vector<2x1x32xf32>
    %5 = vector.broadcast %4 : vector<2x1x32xf32> to vector<2x8x32xf32>
    %6 = arith.mulf %1, %5 : vector<2x8x32xf32>
    %cst_6 = arith.constant dense<0.000000e+00> : vector<2x8xf32>
    %7 = vector.multi_reduction <add>, %6, %cst_6 [2] : vector<2x8x32xf32> to vector<2x8xf32>
    %cst_7 = arith.constant dense<0xFF800000> : vector<2xf32>
    %8 = vector.multi_reduction <maximumf>, %7, %cst_7 [1] : vector<2x8xf32> to vector<2xf32>
    %9 = vector.shape_cast %8 : vector<2xf32> to vector<2x1xf32>
    %10 = vector.broadcast %9 : vector<2x1xf32> to vector<2x8xf32>
    %11 = arith.subf %7, %10 : vector<2x8xf32>
    %12 = math.exp %11 : vector<2x8xf32>
    %cst_8 = arith.constant dense<0.000000e+00> : vector<2xf32>
    %13 = vector.multi_reduction <add>, %12, %cst_8 [1] : vector<2x8xf32> to vector<2xf32>
    %14 = vector.shape_cast %13 : vector<2xf32> to vector<2x1xf32>
    %15 = vector.broadcast %14 : vector<2x1xf32> to vector<2x8xf32>
    %16 = arith.divf %12, %15 : vector<2x8xf32>
    %17 = vector.shape_cast %16 : vector<2x8xf32> to vector<2x8x1xf32>
    %18 = vector.broadcast %17 : vector<2x8x1xf32> to vector<2x8x32xf32>
    %19 = arith.mulf %18, %1 : vector<2x8x32xf32>
    %cst_9 = arith.constant dense<0.000000e+00> : vector<2x32xf32>
    %20 = vector.multi_reduction <add>, %19, %cst_9 [1] : vector<2x8x32xf32> to vector<2x32xf32>
    %c0_10 = arith.constant 0 : index
    %c0_11 = arith.constant 0 : index
    %21 = vector.load %arg4[%c0_10, %c0_11] : memref<32x32xf32, #tpu.memory_space<vmem>>, vector<32x32xf32>
    %cst_12 = arith.constant dense<0.000000e+00> : vector<2x32xf32>
    %22 = tpu.matmul %20, %21, %cst_12 {dimension_numbers = #tpu.dot_dimension_numbers<[1], [0], [0], [1], [0, 0, 1, 1], [], []>} : vector<2x32xf32>, vector<32x32xf32>, vector<2x32xf32> -> vector<2x32xf32>
    %c0_13 = arith.constant 0 : index
    %c0_14 = arith.constant 0 : index
    %23 = vector.load %arg5[%c0_13, %c0_14] : memref<32x32xf32, #tpu.memory_space<vmem>>, vector<32x32xf32>
    %cst_15 = arith.constant dense<0.000000e+00> : vector<2x32xf32>
    %24 = tpu.matmul %0, %23, %cst_15 {dimension_numbers = #tpu.dot_dimension_numbers<[1], [0], [0], [1], [0, 0, 1, 1], [], []>} : vector<2x32xf32>, vector<32x32xf32>, vector<2x32xf32> -> vector<2x32xf32>
    %25 = arith.addf %22, %24 : vector<2x32xf32>
    %26 = math.tanh %25 : vector<2x32xf32>
    %c0_16 = arith.constant 0 : index
    %c0_17 = arith.constant 0 : index
    %27 = vector.load %arg6[%c0_16, %c0_17] : memref<2x32xf32, #tpu.memory_space<vmem>>, vector<2x32xf32>
    tpu.vector_store %arg6[%c0_16, %c0_17], %26 {strides = array<i32>} : memref<2x32xf32, #tpu.memory_space<vmem>>, vector<2x32xf32>,
    %c0_18 = arith.constant 0 : index
    %c0_19 = arith.constant 0 : index
    %28 = vector.load %arg7[%c0_18, %c0_19] : memref<2x8xf32, #tpu.memory_space<vmem>>, vector<2x8xf32>
    tpu.vector_store %arg7[%c0_18, %c0_19], %16 {strides = array<i32>} : memref<2x8xf32, #tpu.memory_space<vmem>>, vector<2x8xf32>,
    return
  }
  func.func @transform_0(%arg0: i32) -> (i32, i32) {
    %c0_i32 = arith.constant 0 : i32
    %c0_i32_0 = arith.constant 0 : i32
    return %arg0, %c0_i32 : i32, i32
  }
  func.func @transform_1(%arg0: i32) -> (i32, i32, i32) {
    %c0_i32 = arith.constant 0 : i32
    %c0_i32_0 = arith.constant 0 : i32
    %c0_i32_1 = arith.constant 0 : i32
    return %arg0, %c0_i32, %c0_i32_0 : i32, i32, i32
  }
  func.func @transform_2(%arg0: i32) -> (i32, i32) {
    %c0_i32 = arith.constant 0 : i32
    %c0_i32_0 = arith.constant 0 : i32
    %c0_i32_1 = arith.constant 0 : i32
    return %c0_i32, %c0_i32_0 : i32, i32
  }
  func.func @transform_3(%arg0: i32) -> (i32, i32) {
    %c0_i32 = arith.constant 0 : i32
    %c0_i32_0 = arith.constant 0 : i32
    %c0_i32_1 = arith.constant 0 : i32
    return %c0_i32, %c0_i32_0 : i32, i32
  }
  func.func @transform_4(%arg0: i32) -> (i32, i32) {
    %c0_i32 = arith.constant 0 : i32
    %c0_i32_0 = arith.constant 0 : i32
    %c0_i32_1 = arith.constant 0 : i32
    return %c0_i32, %c0_i32_0 : i32, i32
  }
  func.func @transform_5(%arg0: i32) -> (i32, i32) {
    %c0_i32 = arith.constant 0 : i32
    %c0_i32_0 = arith.constant 0 : i32
    return %arg0, %c0_i32 : i32, i32
  }
  func.func @transform_6(%arg0: i32) -> (i32, i32) {
    %c0_i32 = arith.constant 0 : i32
    %c0_i32_0 = arith.constant 0 : i32
    return %arg0, %c0_i32 : i32, i32
  }
}

</mosaic_0001>

<bundles_post_ra>
// kernel: tpu_custom_call.1
= control target key start
LH: loop header
LB: loop body
LE: loop exit
PB: predicated region body
PF: predicated region fallthrough
CT: control target
= control target key end

     0   :  { %12 = vsyncpa [#allocation3], 0  ;;  %s645_s0 = inlined_call_operand.hbm [shape: f32[2,32], index: 0, kind: input, shape index: {}]   ;;  %s646_s1 = inlined_call_operand.hbm [shape: f32[2,8,32], index: 1, kind: input, shape index: {}]   ;;  %s647_s2 = inlined_call_operand.hbm [shape: f32[32,32], index: 2, kind: input, shape index: {}]   ;;  %s648_s3 = inlined_call_operand.hbm [shape: f32[32,32], index: 3, kind: input, shape index: {}]   ;;  %s649_s4 = inlined_call_operand.hbm [shape: f32[32,32], index: 4, kind: input, shape index: {}]   ;;  %s650_s5 = inlined_call_operand.hbm [shape: f32[2,32], index: 5, kind: output, shape index: {0}]   ;;  %s651_s6 = inlined_call_operand.hbm [shape: f32[2,8], index: 6, kind: output, shape index: {1}]  }
   0x1   :  { %13 = vsyncpa [#allocation6], 0 }
   0x2   :  { %14 = vsyncpa [#allocation9], 0 }
   0x3   :  { %15 = vsyncpa [#allocation4], 0  ;;  %s32_s23 = sshll.u32 %s646_s1, 4  ;;  %s33_s23 = int_to_ptr.hbm [resolvable:$true] %s32_s23 }
   0x4   :  { %16 = vsyncpa [#allocation13], 0  ;;  %s545_s24 = smov [#allocation5]   ;;  %s58_s28 = sshll.u32 %s648_s3, 4  ;;  %s59_s28 = int_to_ptr.hbm [resolvable:$true] %s58_s28 }
   0x5   :  { %s34_s25 = sshll.u32 %s545_s24, 4  ;;  %s546_s29 = smov 128   ;;  %s35_s25 = int_to_ptr.vmem [resolvable:$true] %s34_s25 }
   0x6   :  { %s547_s30 = smov 8   ;;  %s548_s7 = smov [#allocation8]  }
   0x7   :  { %40 = dma.hbm_to_vmem [thread:$0]  %s33_s23, 256, %s35_s25, [#allocation6], %s546_s29, %s546_s29, %s547_s30  }
   0x8   :  { %s60_s8 = sshll.u32 %s548_s7, 4  ;;  %s22_s11 = sshll.u32 %s645_s0, 4  ;;  %s61_s8 = int_to_ptr.vmem [resolvable:$true] %s60_s8  ;;  %s23_s11 = int_to_ptr.hbm [resolvable:$true] %s22_s11 }
   0x9   :  { %66 = dma.hbm_to_vmem [thread:$0]  %s59_s28, 512, %s61_s8, [#allocation9], %s546_s29, %s546_s29, %s547_s30  }
   0xa   :  { %s45_s13 = sshll.u32 %s647_s2, 4  ;;  %s549_s14 = smov [#allocation2]   ;;  %s46_s13 = int_to_ptr.hbm [resolvable:$true] %s45_s13 }
   0xb   :  { %s24_s15 = sshll.u32 %s549_s14, 4  ;;  %s550_s3 = smov [#allocation7]   ;;  %s25_s15 = int_to_ptr.vmem [resolvable:$true] %s24_s15 }
   0xc   :  { %27 = dma.hbm_to_vmem [thread:$0]  %s23_s11, 32, %s25_s15, [#allocation3]  }
   0xd   :  { %s47_s16 = sshll.u32 %s550_s3, 4  ;;  %s71_s19 = sshll.u32 %s649_s4, 4  ;;  %s48_s16 = int_to_ptr.vmem [resolvable:$true] %s47_s16  ;;  %s72_s19 = int_to_ptr.hbm [resolvable:$true] %s71_s19 }
   0xe   :  { %53 = dma.hbm_to_vmem [thread:$0]  %s46_s13, 512, %s48_s16, [#allocation6], %s546_s29, %s546_s29, %s547_s30  }
   0xf   :  { %s551_s0 = smov [#allocation10]  }
  0x10   :  { %s73_s20 = sshll.u32 %s551_s0, 4  ;;  %s74_s20 = int_to_ptr.vmem [resolvable:$true] %s73_s20 }
  0x11   :  { %79 = dma.hbm_to_vmem [thread:$0]  %s72_s19, 512, %s74_s20, [#allocation9], %s546_s29, %s546_s29, %s547_s30  }
  0x12   :  { %535 = dma.done.wait [#allocation3], 32  }
  0x13   :  { %536 = vsyncadd [#allocation3], 4294967264 }
  0x14   :  { %537 = dma.done.wait [#allocation6], 768  }
  0x15   :  { %538 = vsyncadd [#allocation6], 4294966528 }
  0x16   :  { %539 = dma.done.wait [#allocation9], 1024  }
  0x17   :  { %540 = vsyncadd [#allocation9], 4294966272  ;;  %v106_v0 = vld [vmem:[#allocation7 + $0x18] sm:$0xff]  ;;  %v105_v1 = vld [vmem:[#allocation7 + $0x10] sm:$0xff]  ;;  %vm107_vm0 = vcmask 261120   ;;  %v147_v16 = vlaneseq  ;;  %vm151_vm1 = vcmask 1041409  }
  0x18   :  { %123 = vmatpush.msra.mxu0 %v106_v0  ;;  %v104_v2 = vld [vmem:[#allocation7 + $0x8] sm:$0xff]  ;;  %v103_v3 = vld [vmem:[#allocation7] sm:$0xff]  ;;  %v609_v6 = vld [vmem:[#allocation5] sm:$0xff]  ;;  %vm154_vm2 = vcmask 58368   ;;  %v552_v23 = vmov 0   ;;  %s553_s2 = smov [#allocation12]  }
  0x19   :  { %v605_v4 = vld [vmem:[#allocation2] sm:$0x3]  ;;  %v613_v12 = vld [vmem:[#allocation5 + $0x8] sm:$0xff]  ;;  %v617_v17 = vand.u32 127, %v147_v16  ;;  %355 = vset.pattern.permute.xlu2 %v552_v23  ;;  %354 = vset.pattern.permute.xlu1 %v552_v23  ;;  %s322_s4 = sshll.u32 %s553_s2, 4  ;;  %s324_s23 = sshll.u32 %s651_s6, 4  ;;  %s323_s4 = int_to_ptr.vmem [resolvable:$true] %s322_s4  ;;  %s325_s23 = int_to_ptr.hbm [resolvable:$true] %s324_s23 }
  0x1a   :  { %124 = vmatpush.msra.mxu0 %v105_v1  ;;  %356 = vset.pattern.permute.xlu0 %v552_v23  ;;  %v248_v0 = vld [vmem:[#allocation8 + $0x18] sm:$0xff]  ;;  %v247_v1 = vld [vmem:[#allocation8 + $0x10] sm:$0xff]  ;;  %s554_s24 = smov [#allocation11]   ;;  %s313_s28 = sshll.u32 %s650_s5, 4  ;;  %vm299_vm11 = vcmask 254976   ;;  %s314_s28 = int_to_ptr.hbm [resolvable:$true] %s313_s28 }
  0x1b   :  { %290 = vmatpush.msra.mxu2 %v248_v0  ;;  %s311_s25 = sshll.u32 %s554_s24, 4  ;;  %s312_s25 = int_to_ptr.vmem [resolvable:$true] %s311_s25 }
  0x1c   :  { %125 = vmatpush.msra.mxu0 %v104_v2  ;;  %v246_v2 = vld [vmem:[#allocation8 + $0x8] sm:$0xff] }
  0x1d   :  { %291 = vmatpush.msra.mxu2 %v247_v1 }
  0x1e   :  { %126 = vmatpush.msra.mxu0 %v103_v3  ;;  %v252_v3 = vld [vmem:[#allocation10 + $0x18] sm:$0xff] }
  0x1f   :  { %341 = vmatmul.msk.f32.vlgmr.msra.gmra.mxu0 %vm107_vm0, %v605_v4  ;;  %265 = vmatpush.msra.mxu1 %v252_v3 }
  0x20   :  { %292 = vmatpush.msra.mxu2 %v246_v2 }
  0x9c   :  { %v128_v5 = vpop.f32.mrf.mxu0 }
  0x9d   :  { %v132_v7 = vrot.slane %v128_v5, 1  ;;  %v133_v8 = vperm.slane %v128_v5, 0  ;;  %v245_v5 = vld [vmem:[#allocation8] sm:$0xff] }
  0x9e   :  { %293 = vmatpush.msra.mxu2 %v245_v5 }
  0x9f   :  { %v137_v9 = vmul.f32 %v133_v8, %v609_v6  ;;  %v134_v10 = vperm.slane %v132_v7, 0  ;;  %v251_v7 = vld [vmem:[#allocation10 + $0x10] sm:$0xff]  ;;  %v250_v8 = vld [vmem:[#allocation10 + $0x8] sm:$0xff] }
  0xa0   :  { %266 = vmatpush.msra.mxu1 %v251_v7 }
  0xa1   :  { %v139_v11 = vsel %vm107_vm0, %v137_v9, 0.0  ;;  %v138_v13 = vmul.f32 %v134_v10, %v613_v12  ;;  %v249_v9 = vld [vmem:[#allocation10] sm:$0xff] }
  0xa2   :  { %140 = vadd.xlane.f32.xlu0 %v139_v11  ;;  %267 = vmatpush.msra.mxu1 %v250_v8 }
  0xa3   :  { %v142_v14 = vsel %vm107_vm0, %v138_v13, 0.0 }
  0xa4   :  { %268 = vmatpush.msra.mxu1 %v249_v9 }
  0xa5   :  { %342 = vmatmul.msk.f32.vlgmr.msra.gmra.mxu1 %vm107_vm0, %v605_v4 }
  0xaa   :  { %143 = vadd.xlane.f32.xlu0 %v142_v14 }
 0x115   :  { %v141_v15 = vpop.xlane.xlu0 %140 }
 0x116   :  { %v149_v19 = vperm.slane %v141_v15, %v617_v17 }
 0x11d   :  { %v144_v18 = vpop.xlane.xlu0 %143 }
 0x11e   :  { %v150_v20 = vperm.slane %v144_v18, %v617_v17 }
 0x120   :  { %v152_v21 = vsel %vm151_vm1, %v150_v20, %v149_v19 }
 0x121   :  { %v155_v22 = vsel %vm154_vm2, %v152_v21, -inf }
 0x122   :  { %156 = vmax.xlane.f32.xlu1 %v155_v22 }
 0x195   :  { %v157_v24 = vpop.xlane.xlu1 %156 }
 0x196   :  { %v159_v25 = vperm.slane %v157_v24, 0  ;;  %v160_v26 = vperm.slane %v157_v24, 1 }
 0x198   :  { %v163_v27 = vsub.f32 %v141_v15, %v159_v25  ;;  %v164_v28 = vsub.f32 %v144_v18, %v160_v26 }
 0x19a   :  { %v165_v29 = vmul.f32 1.442695, %v163_v27  ;;  %v167_v30 = vmul.f32 1.442695, %v164_v28 }
 0x19c   :  { %357 = vpow2.f32 %v165_v29 }
 0x19d   :  { %359 = vpow2.f32 %v167_v30  ;;  %v270_v30 = vpop.f32.mrf.mxu1 }
 0x1a2   :  { %v358_v31 = vpop.eup %357 }
 0x1a3   :  { %v360_v32 = vpop.eup %359  ;;  %172 = vperm.xlu1 %354, %v358_v31  }
 0x1a4   :  { %175 = vperm.xlu2 %355, %v360_v32  }
 0x1fe   :  { %v176_v33 = vpop.permute.xlu2 %175 }
 0x1ff   :  { %v178_v35 = vperm.slane %v176_v33, %v617_v17 }
 0x215   :  { %v173_v34 = vpop.permute.xlu1 %172 }
 0x216   :  { %v177_v36 = vperm.slane %v173_v34, %v617_v17 }
 0x218   :  { %v179_v37 = vsel %vm151_vm1, %v178_v35, %v177_v36 }
 0x219   :  { %v181_v38 = vsel %vm154_vm2, %v179_v37, 0.0 }
 0x21a   :  { %182 = vadd.xlane.f32.xlu2 %v181_v38 }
 0x28d   :  { %v183_v39 = vpop.xlane.xlu2 %182 }
 0x28e   :  { %v185_v40 = vperm.slane %v183_v39, 0  ;;  %v186_v41 = vperm.slane %v183_v39, 1 }
 0x290   :  { %361 = vrcp.f32 %v185_v40  ;;  %v200_v48 = vand.u32 2147483648, %v185_v40  ;;  %v215_v49 = vand.u32 2147483648, %v186_v41  ;;  %v198_v51 = vand.u32 2147483647, %v185_v40 }
 0x291   :  { %363 = vrcp.f32 %v186_v41  ;;  %v213_v53 = vand.u32 2147483647, %v186_v41  ;;  %vm194_vm5 = vweird.f32 %v185_v40  ;;  %vm209_vm6 = vweird.f32 %v186_v41 }
 0x292   :  { %v201_v56 = vor.u32 1.1754944e-38, %v200_v48  ;;  %v216_v57 = vor.u32 1.1754944e-38, %v215_v49  ;;  %vm199_vm9 = vcmp.eq.f32.partialorder %v198_v51, 8.507059e+37 }
 0x293   :  { %vm214_vm10 = vcmp.eq.f32.partialorder %v213_v53, 8.507059e+37 }
 0x296   :  { %v362_v42 = vpop.eup %361 }
 0x297   :  { %v364_v43 = vpop.eup %363  ;;  %v190_v44 = vmul.f32 %v362_v42, %v185_v40  ;;  %vm195_vm3 = vweird.f32 %v362_v42 }
 0x298   :  { %v205_v45 = vmul.f32 %v364_v43, %v186_v41  ;;  %vm210_vm4 = vweird.f32 %v364_v43  ;;  %vm196_vm7 = vmor %vm194_vm5, %vm195_vm3 }
 0x299   :  { %v191_v46 = vsub.f32 1.0, %v190_v44  ;;  %vm211_vm8 = vmor %vm209_vm6, %vm210_vm4 }
 0x29a   :  { %v206_v47 = vsub.f32 1.0, %v205_v45 }
 0x29b   :  { %v192_v50 = vmul.f32 %v362_v42, %v191_v46 }
 0x29c   :  { %v207_v52 = vmul.f32 %v364_v43, %v206_v47 }
 0x29d   :  { %v193_v54 = vadd.f32 %v362_v42, %v192_v50 }
 0x29e   :  { %v208_v55 = vadd.f32 %v364_v43, %v207_v52 }
 0x29f   :  { %v197_v58 = vsel %vm196_vm7, %v362_v42, %v193_v54 }
 0x2a0   :  { %v212_v59 = vsel %vm211_vm8, %v364_v43, %v208_v55  ;;  %v202_v60 = vsel %vm199_vm9, %v201_v56, %v197_v58 }
 0x2a1   :  { %v217_v61 = vsel %vm214_vm10, %v216_v57, %v212_v59  ;;  %v203_v62 = vmul.f32 %v358_v31, %v202_v60 }
 0x2a2   :  { %v218_v63 = vmul.f32 %v360_v32, %v217_v61 }
 0x2a3   :  { %221 = vperm.xlu0 %356, %v203_v62  }
 0x2a4   :  { %226 = vperm.xlu1 %354, %v218_v63  }
 0x315   :  { %v222_v10 = vpop.permute.xlu0 %221 }
 0x316   :  { %v227_v11 = vpop.permute.xlu1 %226  ;;  %v229_v13 = vmul.f32 %v222_v10, %v609_v6  ;;  %v301_v14 = vperm.slane %v222_v10, %v617_v17 }
 0x317   :  { %v230_v15 = vmul.f32 %v227_v11, %v613_v12  ;;  %v302_v16 = vperm.slane %v227_v11, %v617_v17 }
 0x318   :  { %v231_v18 = vsel %vm107_vm0, %v229_v13, 0.0 }
 0x319   :  { %v238_v19 = vsel %vm107_vm0, %v230_v15, 0.0  ;;  %v232_v20 = vrot.slane %v231_v18, 4  ;;  %v303_v21 = vsel %vm151_vm1, %v302_v16, %v301_v14 }
 0x31a   :  { %v239_v22 = vrot.slane %v238_v19, 4  ;;  %305 = vst.msk [vmem:[#allocation12] sm:$0x3] %vm154_vm2, %v303_v21 }
 0x31b   :  { %v233_v4 = vadd.f32 %v232_v20, %v231_v18  ;;  %327 = dma.vmem_to_hbm [thread:$0]  %s323_s4, 32, %s325_s23, [#allocation13]  }
 0x31c   :  { %v240_v23 = vadd.f32 %v239_v22, %v238_v19 }
 0x31d   :  { %v234_v24 = vrot.slane %v233_v4, 2 }
 0x31e   :  { %v241_v6 = vrot.slane %v240_v23, 2 }
 0x31f   :  { %v235_v25 = vadd.f32 %v234_v24, %v233_v4 }
 0x320   :  { %v242_v26 = vadd.f32 %v241_v6, %v240_v23 }
 0x321   :  { %v236_v27 = vrot.slane %v235_v25, 1 }
 0x322   :  { %v243_v12 = vrot.slane %v242_v26, 1 }
 0x323   :  { %v237_v28 = vadd.f32 %v236_v27, %v235_v25 }
 0x324   :  { %v244_v17 = vadd.f32 %v243_v12, %v242_v26 }
 0x326   :  { %v275_v29 = vsel %vm151_vm1, %v244_v17, %v237_v28 }
 0x327   :  { %343 = vmatmul.msk.f32.vlgmr.msra.gmra.mxu2 %vm107_vm0, %v275_v29 }
 0x3aa   :  { %v295_v31 = vpop.f32.mrf.mxu2 }
 0x3ab   :  { %v296_v32 = vadd.f32 %v295_v31, %v270_v30 }
 0x3ad   :  { %365 = vtanh.f32 %v296_v32 }
 0x3b3   :  { %v366_v33 = vpop.eup %365 }
 0x3b4   :  { %300 = vst.msk [vmem:[#allocation11] sm:$0x3] %vm299_vm11, %v366_v33 }
 0x3b5   :  { %316 = dma.vmem_to_hbm [thread:$0]  %s312_s25, 32, %s314_s28, [#allocation4]  }
 0x3b6   :  { %541 = dma.done.wait [#allocation4], 32  }
 0x3b7   :  { %542 = vsyncadd [#allocation4], 4294967264 }
 0x3b8   :  { %543 = dma.done.wait [#allocation13], 32  }
 0x3b9   :  { %544 = vsyncadd [#allocation13], 4294967264 }
 0x3ba   :  { %336 = vsyncpa [#allocation3], 1 }
 0x3bb   :  { %337 = vsyncpa [#allocation6], 1 }
 0x3bc   :  { %338 = vsyncpa [#allocation9], 1 }
 0x3bd   :  { %339 = vsyncpa [#allocation4], 1 }
 0x3be   :  { %340 = vsyncpa [#allocation13], 1 }

</bundles_post_ra>
